<compile_context>
chip_gen: v6e
topology: v6e:2x2x1
jax: 0.10.0
libtpu: 0.0.40
codegen_flags: <defaults>
</compile_context>

<pallas_src>
import jax
import jax.numpy as jnp
from jax.experimental import pallas as pl
from jax.experimental.pallas import tpu as pltpu


def _scale_kernel(x_ref, s_ref, o_ref):
    # s_ref is (row_tile, 1) (per-row scale, broadcasts over lanes) or
    # (1, col_tile) (per-lane scale, broadcasts over sublanes).
    o_ref[...] = (x_ref[...] * s_ref[...]).astype(o_ref.dtype)


def _round_up(x, m):
    return ((x + m - 1) // m) * m


def _pick_col_tile(cols_total, max_col=8192):
    """Lane tile: full extent when it fits; else the largest multiple of 128
    that divides cols_total (no ragged masked edge block); else max_col."""
    if cols_total <= max_col:
        return cols_total
    for cand in range(max_col, 127, -128):
        if cols_total % cand == 0:
            return cand
    return max_col


def sfg_conv(x, f_list, task):
    """Pallas implementation of SFG_Conv.forward(x, task).

    x      : (N, C, H, W) float array (f32 or bf16 -- no in-kernel upcast)
    f_list : (task_num, C) float array (the ParameterList stacked)
    task   : python int (static; a traced task would add a gather outside
             the kernel)
    """
    N, C, H, W = x.shape
    f = f_list[task].astype(x.dtype)  # (C,)

    HW = H * W
    CHW = C * HW
    itemsize = jnp.dtype(x.dtype).itemsize
    # Sublane granularity per dtype width (f32: 8, bf16: 16, int8/fp8: 32).
    sublane = {4: 8, 2: 16, 1: 32}[itemsize]

    # ---- per-generation sizing (v5e/v6e: 128 MiB VMEM, v7x: 64 MiB/TC) ----
    try:
        vmem_cap = int(pltpu.get_tpu_info().vmem_capacity_bytes)
    except Exception:
        vmem_cap = 64 * 1024 * 1024  # conservative fallback (v7x per-TC)
    if vmem_cap >= 96 * 1024 * 1024:
        target_block_bytes = 8 * 1024 * 1024   # v5e / v6e
    else:
        target_block_bytes = 4 * 1024 * 1024   # v7x (HBM-bound; 4 MiB saturates)

    # ---- layout selection: keep output stores lane-dense whenever possible ----
    if HW % 128 == 0:
        rows_total, cols_total = N * C, HW
        scale = jnp.tile(f, N).reshape(rows_total, 1)      # per-row scale
        row_scale = True
    elif CHW % 128 == 0:
        rows_total, cols_total = N, CHW                    # lane-dense repack
        scale = jnp.repeat(f, HW).reshape(1, cols_total)   # per-lane scale
        row_scale = False
    else:
        rows_total, cols_total = N * C, HW                 # masked-edge fallback
        scale = jnp.tile(f, N).reshape(rows_total, 1)
        row_scale = True

    x2 = x.reshape(rows_total, cols_total)

    # ---- tiling ----
    col_tile = _pick_col_tile(cols_total)
    col_pad = _round_up(col_tile, 128)
    rows_budget = max(
        sublane, (target_block_bytes // (col_pad * itemsize)) // sublane * sublane
    )
    row_tile = rows_total if rows_total <= rows_budget else rows_budget
    n_row_blocks = pl.cdiv(rows_total, row_tile)
    n_col_blocks = pl.cdiv(cols_total, col_tile)

    # ---- v7x (2 TCs/chip): keep the parallel space splittable & balanced ----
    block_bytes = _round_up(row_tile, sublane) * col_pad * itemsize
    if n_row_blocks == 1 and n_col_blocks == 1 and block_bytes >= (1 << 20):
        if rows_total >= 2 * sublane:
            row_tile = _round_up(pl.cdiv(rows_total, 2), sublane)
            n_row_blocks = pl.cdiv(rows_total, row_tile)
        elif cols_total % 256 == 0:
            col_tile = _round_up(cols_total // 2, 128)
            n_col_blocks = pl.cdiv(cols_total, col_tile)
    if n_row_blocks > 1 and (n_row_blocks * n_col_blocks) % 2 == 1:
        # Nudge the row tiling to an even total block count (best effort).
        cand = max(sublane, _round_up(pl.cdiv(rows_total, n_row_blocks + 1), sublane))
        if (pl.cdiv(rows_total, cand) * n_col_blocks) % 2 == 0:
            row_tile = cand
            n_row_blocks = pl.cdiv(rows_total, cand)

    # ---- grid: larger-count parallel axis first (megacore sharding) ----
    if n_row_blocks >= n_col_blocks:
        grid = (n_row_blocks, n_col_blocks)
        data_map = lambda i, j: (i, j)
        scale_map = (lambda i, j: (i, 0)) if row_scale else (lambda i, j: (0, j))
    else:
        grid = (n_col_blocks, n_row_blocks)
        data_map = lambda j, i: (i, j)
        scale_map = (lambda j, i: (i, 0)) if row_scale else (lambda j, i: (0, j))

    scale_block = (row_tile, 1) if row_scale else (1, col_tile)

    # ---- VMEM budget: computed from the actual double-buffered requirement ----
    def _buf(r, c):
        return _round_up(max(r, 1), sublane) * _round_up(max(c, 1), 128) * itemsize

    need = 2 * 2 * _buf(row_tile, col_tile) + 2 * _buf(*scale_block)
    vmem_limit = int(
        min(max(int(need * 1.3) + (2 << 20), 16 << 20), int(vmem_cap * 0.85))
    )

    out2 = pl.pallas_call(
        _scale_kernel,
        out_shape=jax.ShapeDtypeStruct((rows_total, cols_total), x.dtype),
        grid_spec=pltpu.PrefetchScalarGridSpec(
            num_scalar_prefetch=0,
            grid=grid,
            in_specs=[
                pl.BlockSpec((row_tile, col_tile), data_map),
                pl.BlockSpec(scale_block, scale_map),
            ],
            out_specs=pl.BlockSpec((row_tile, col_tile), data_map),
        ),
        compiler_params=pltpu.CompilerParams(
            dimension_semantics=("parallel", "parallel"),
            vmem_limit_bytes=vmem_limit,
        ),
    )(x2, scale)

    return out2.reshape(N, C, H, W)


def _reference(x, f_list, task):
    return x * f_list[task][None, :, None, None]


if __name__ == "__main__":
    key = jax.random.PRNGKey(0)
    kx, kf, kx2, kf2, kx3, kf3, kx4, kf4 = jax.random.split(key, 8)
    task_num = 3

    # --- main check: small shapes consistent with the module (f32, HW%128==0) ---
    N, C, H, W = 2, 4, 16, 16
    x = jax.random.normal(kx, (N, C, H, W), dtype=jnp.float32)
    f_list = 1.0 + 0.1 * jax.random.normal(kf, (task_num, C), dtype=jnp.float32)
    out = jax.block_until_ready(sfg_conv(x, f_list, 1))
    ref = _reference(x, f_list, 1)
    assert out.shape == x.shape
    assert jnp.allclose(out, ref, atol=1e-6, rtol=1e-6)

    # --- bf16 path (16-row sublane granularity, no in-kernel upcast) ---
    xb = jax.random.normal(kx2, (4, 8, 16, 16), dtype=jnp.bfloat16)
    fb = (1.0 + 0.1 * jax.random.normal(kf2, (task_num, 8), dtype=jnp.float32)
          ).astype(jnp.bfloat16)
    outb = jax.block_until_ready(sfg_conv(xb, fb, 2))
    refb = _reference(xb, fb, 2)
    assert jnp.allclose(outb.astype(jnp.float32), refb.astype(jnp.float32),
                        atol=2e-2, rtol=2e-2)

    # --- odd shapes (neither HW nor C*HW a multiple of 128 -> masked fallback) ---
    xo = jax.random.normal(kx3, (3, 5, 7, 7), dtype=jnp.float32)
    fo = 1.0 + 0.1 * jax.random.normal(kf3, (task_num, 5), dtype=jnp.float32)
    outo = jax.block_until_ready(sfg_conv(xo, fo, 0))
    refo = _reference(xo, fo, 0)
    assert jnp.allclose(outo, refo, atol=1e-6, rtol=1e-6)

    # --- lane-dense repack path (HW=64 not %128, but C*HW=256 is) ---
    xr = jax.random.normal(kx4, (2, 4, 8, 8), dtype=jnp.float32)
    fr = 1.0 + 0.1 * jax.random.normal(kf4, (task_num, 4), dtype=jnp.float32)
    outr = jax.block_until_ready(sfg_conv(xr, fr, 2))
    refr = _reference(xr, fr, 2)
    assert jnp.allclose(outr, refr, atol=1e-6, rtol=1e-6)

    print("KERNEL_OK")
</pallas_src>

<mosaic_0001>
module attributes {stable_mosaic.version = 11 : i64} {
  func.func @_scale_kernel(%arg0: i32, %arg1: i32, %arg2: memref<8x256xf32, #tpu.memory_space<vmem>>, %arg3: memref<8x1xf32, #tpu.memory_space<vmem>>, %arg4: memref<8x256xf32, #tpu.memory_space<vmem>>) attributes {dimension_semantics = [#tpu.dimension_semantics<parallel>, #tpu.dimension_semantics<parallel>], iteration_bounds = array<i64: 1, 1>, scalar_prefetch = 0 : i64, scratch_operands = 0 : i64, tpu.core_type = #tpu.core_type<tc>, window_params = [{transform_indices = @transform_0, window_bounds = array<i64: 8, 256>}, {transform_indices = @transform_1, window_bounds = array<i64: 8, 1>}, {transform_indices = @transform_2, window_bounds = array<i64: 8, 256>}]} {
    %c0 = arith.constant 0 : index
    %c0_0 = arith.constant 0 : index
    %0 = vector.load %arg2[%c0, %c0_0] : memref<8x256xf32, #tpu.memory_space<vmem>>, vector<8x256xf32>
    %c0_1 = arith.constant 0 : index
    %c0_2 = arith.constant 0 : index
    %1 = vector.load %arg3[%c0_1, %c0_2] : memref<8x1xf32, #tpu.memory_space<vmem>>, vector<8x1xf32>
    %2 = vector.broadcast %1 : vector<8x1xf32> to vector<8x256xf32>
    %3 = arith.mulf %0, %2 : vector<8x256xf32>
    %c0_3 = arith.constant 0 : index
    %c0_4 = arith.constant 0 : index
    %4 = vector.load %arg4[%c0_3, %c0_4] : memref<8x256xf32, #tpu.memory_space<vmem>>, vector<8x256xf32>
    tpu.vector_store %arg4[%c0_3, %c0_4], %3 {strides = array<i32>} : memref<8x256xf32, #tpu.memory_space<vmem>>, vector<8x256xf32>,
    return
  }
  func.func @transform_0(%arg0: i32, %arg1: i32) -> (i32, i32) {
    %c0_i32 = arith.constant 0 : i32
    return %arg0, %arg1 : i32, i32
  }
  func.func @transform_1(%arg0: i32, %arg1: i32) -> (i32, i32) {
    %c0_i32 = arith.constant 0 : i32
    %c0_i32_0 = arith.constant 0 : i32
    return %arg0, %c0_i32 : i32, i32
  }
  func.func @transform_2(%arg0: i32, %arg1: i32) -> (i32, i32) {
    %c0_i32 = arith.constant 0 : i32
    return %arg0, %arg1 : i32, i32
  }
}

</mosaic_0001>

<bundles_post_ra>
// kernel: tpu_custom_call.1
= control target key start
LH: loop header
LB: loop body
LE: loop exit
PB: predicated region body
PF: predicated region fallthrough
CT: control target
= control target key end

     0   :  { %7 = vsyncpa [#allocation3], 0  ;;  %s126_s0 = inlined_call_operand.hbm [shape: f32[8,256], index: 0, kind: input, shape index: {}]   ;;  %s127_s1 = inlined_call_operand.vmem [shape: f32[8,1], index: 1, kind: input, shape index: {}]   ;;  %s128_s2 = inlined_call_operand.hbm [shape: f32[8,256], index: 2, kind: output, shape index: {}]  }
   0x1   :  { %8 = vsyncpa [#allocation4], 0  ;;  %s99_s9 = smov [#allocation2]  }
   0x2   :  { %s15_s10 = sshll.u32 %s99_s9, 4  ;;  %s16_s10 = int_to_ptr.vmem [resolvable:$true] %s15_s10 }
   0x3   :  { %s63_s11 = scalar_lea.vmem %s16_s10, 256  ;;  %p68_p1 = scmp.lt.s32.totalorder %s16_s10, %s16_s10 }
   0x4   :  { %p64_p0 = scmp.ne.s32.totalorder %s16_s10, %s63_s11  ;;  %p69_p2 = scmp.lt.s32.totalorder %s63_s11, %s63_s11 }
   0x6   :  { %p70_p3 = por %p69_p2, %p68_p1 }
   0x8   :  { %p71_p4 = pnand %p70_p3, %p64_p0 }
   0xa   :  { %74 = shalt.err (!%p71_p4)
}
   0xb   :  { %18 = dma.hbm_to_vmem [thread:$0]  %s126_s0, 256, %s16_s10, [#allocation3]  }
   0xc   :  { %95 = dma.done.wait [#allocation3], 256  }
   0xd   :  { %96 = vsyncadd [#allocation3], 4294967040  ;;  %v100_v0 = vmov 0   ;;  %v26_v1 = vld [vmem:[%s127_s1] sm:$0xff]  ;;  %v25_v3 = vld [vmem:[#allocation2 + $0x8] sm:$0xff]  ;;  %s101_s16 = smov [#allocation5]  }
   0xe   :  { %54 = vset.pattern.permute.xlu0 %v100_v0  ;;  %v24_v2 = vld [vmem:[#allocation2] sm:$0xff]  ;;  %s42_s17 = sshll.u32 %s101_s16, 4  ;;  %s43_s17 = int_to_ptr.vmem [resolvable:$true] %s42_s17 }
   0xf   :  { %29 = vperm.xlu0 %54, %v26_v1   ;;  %s75_s0 = scalar_lea.vmem %s43_s17, 256  ;;  %p80_p6 = scmp.lt.s32.totalorder %s43_s17, %s43_s17 }
  0x10   :  { %p76_p5 = scmp.ne.s32.totalorder %s43_s17, %s75_s0  ;;  %p81_p7 = scmp.lt.s32.totalorder %s75_s0, %s75_s0 }
  0x12   :  { %p82_p8 = por %p81_p7, %p80_p6 }
  0x14   :  { %p83_p9 = pnand %p82_p8, %p76_p5 }
  0x8a   :  { %v30_v4 = vpop.permute.xlu0 %29 }
  0x8b   :  { %v32_v5 = vmul.f32 %v30_v4, %v24_v2  ;;  %v33_v6 = vmul.f32 %v30_v4, %v25_v3 }
  0x8d   :  { %34 = vst [vmem:[#allocation5] sm:$0xff] %v32_v5  ;;  %35 = vst [vmem:[#allocation5 + $0x8] sm:$0xff] %v33_v6 }
  0x8e   :  { %86 = shalt.err (!%p83_p9)
}
  0x8f   :  { %45 = dma.vmem_to_hbm [thread:$0]  %s43_s17, 256, %s128_s2, [#allocation4]  }
  0x90   :  { %97 = dma.done.wait [#allocation4], 256  }
  0x91   :  { %98 = vsyncadd [#allocation4], 4294967040 }
  0x92   :  { %49 = vsyncpa [#allocation3], 1 }
  0x93   :  { %50 = vsyncpa [#allocation4], 1 }

</bundles_post_ra>
